<compile_context>
chip_gen: v6e
topology: v6e:2x2x1
jax: 0.10.0
libtpu: 0.0.40
codegen_flags: <defaults>
</compile_context>

<pallas_src>
import functools

import numpy as np
import jax
import jax.numpy as jnp
from jax import lax
from jax.experimental import pallas as pl
from jax.experimental.pallas import tpu as pltpu

_COS_EPS = 1e-8  # torch.nn.functional.cosine_similarity default eps


# --------------------------------------------------------------------------------------
# helpers
# --------------------------------------------------------------------------------------
def _round_up(x, m):
    return -(-x // m) * m


def _choose_row_tile(n_rows, bytes_per_row, vmem_budget=8 * 1024 * 1024, max_tile=512):
    """Largest row tile (multiple of 8, <= max_tile) whose double-buffered per-step blocks
    stay under a conservative VMEM budget (safe for v5e's 16 MiB default scoped limit and
    v7x's 64 MiB physical VMEM)."""
    tile = max_tile
    while tile > 8 and 2 * tile * bytes_per_row > vmem_budget:
        tile //= 2
    tile = max(8, tile)
    tile = min(tile, _round_up(n_rows, 8))
    tile = _round_up(tile, 8)
    r_pad = _round_up(n_rows, tile)
    return tile, r_pad


def _pad_rows(x, r_pad, value=0):
    r = x.shape[0]
    if r == r_pad:
        return x
    pad = [(0, r_pad - r)] + [(0, 0)] * (x.ndim - 1)
    return jnp.pad(x, pad, constant_values=value)


def _log_softmax_f32(x):
    m = jnp.max(x, axis=-1, keepdims=True)
    xs = x - m
    return xs - jnp.log(jnp.sum(jnp.exp(xs), axis=-1, keepdims=True))


def _softmax_and_log_softmax(x):
    """Single exp pass returning (softmax, log_softmax): reuses exp(xs) instead of exp(log_p)."""
    m = jnp.max(x, axis=-1, keepdims=True)
    xs = x - m
    e = jnp.exp(xs)
    s = jnp.sum(e, axis=-1, keepdims=True)
    log_p = xs - jnp.log(s)
    p = e * (1.0 / s)          # per-row reciprocal (EUP) + VPU multiply, no second exp pass
    return p, log_p


# --------------------------------------------------------------------------------------
# Pallas kernels
# --------------------------------------------------------------------------------------
def _fused_logit_kernel(s_ref, t_ref, tgt_ref, itemp_ref, nmask_ref, tfmask_ref,
                        ce_ref, kl_ref, tf_ref, ce_acc, kl_acc, tf_acc):
    """Single pass over the full [B, C] logits:
       - CE at T=1 on normal rows (nmask)
       - KL(softmax(t/T) || softmax(s/T)) at per-row temperature, masked into the
         normal-row sum (kl) and the tf-selected augmented-row sum (tf)."""
    i = pl.program_id(0)

    @pl.when(i == 0)
    def _():
        ce_acc[...] = jnp.zeros_like(ce_acc)
        kl_acc[...] = jnp.zeros_like(kl_acc)
        tf_acc[...] = jnp.zeros_like(tf_acc)

    s = s_ref[...].astype(jnp.float32)
    t = t_ref[...].astype(jnp.float32)
    itemp = itemp_ref[...]            # [TR, 1] f32 per-row inverse temperature
    nmask = nmask_ref[...]            # [TR, 1] f32 normal-row mask (incl. padding)
    tfmask = tfmask_ref[...]          # [TR, 1] f32 tf-selection mask (aug rows only)
    tgt = tgt_ref[...]                # [TR, 1] int32 per-row target class

    # ---- cross entropy at T=1 (no one-hot input; iota compare) ----------------------
    log_s1 = _log_softmax_f32(s)
    cols = lax.broadcasted_iota(jnp.int32, log_s1.shape, 1)
    ce_rows = -jnp.sum(jnp.where(cols == tgt, log_s1, 0.0), axis=-1, keepdims=True)

    # ---- per-row-temperature KL ------------------------------------------------------
    log_q = _log_softmax_f32(s * itemp)
    p, log_p = _softmax_and_log_softmax(t * itemp)
    kl_rows = jnp.sum(p * (log_p - log_q), axis=-1, keepdims=True)

    # widened accumulators: pure VPU adds each step, single cross-reduce at the end
    ce_acc[...] += ce_rows * nmask
    kl_acc[...] += kl_rows * nmask
    tf_acc[...] += kl_rows * tfmask

    @pl.when(i == pl.num_programs(0) - 1)
    def _():
        ce_ref[...] = jnp.sum(ce_acc[...], keepdims=True)
        kl_ref[...] = jnp.sum(kl_acc[...], keepdims=True)
        tf_ref[...] = jnp.sum(tf_acc[...], keepdims=True)


def _masked_kl_kernel(inv_temp, s_ref, t_ref, m_ref, o_ref, acc):
    """Masked batch-sum of per-row KL(softmax(t/T) || softmax(s/T))."""
    i = pl.program_id(0)

    @pl.when(i == 0)
    def _():
        acc[...] = jnp.zeros_like(acc)

    s = s_ref[...].astype(jnp.float32) * inv_temp
    t = t_ref[...].astype(jnp.float32) * inv_temp
    m = m_ref[...]                    # [TR, 1] selection + padding mask

    log_q = _log_softmax_f32(s)
    p, log_p = _softmax_and_log_softmax(t)
    kl_rows = jnp.sum(p * (log_p - log_q), axis=-1, keepdims=True)
    acc[...] += kl_rows * m

    @pl.when(i == pl.num_programs(0) - 1)
    def _():
        o_ref[...] = jnp.sum(acc[...], keepdims=True)


def _cosine_kernel(eps2, sa_ref, sn_ref, sn2_ref, ta_ref, tn_ref, tn2_ref, so_ref, to_ref):
    """cos[i, j] = <a_i, n_j> / max(||a_i|| * ||n_j||, eps).  Student and teacher matrices
    are computed in the same launch.  The K=1 outer product is a VPU broadcast against
    precomputed (1, Bn) squared norms; only the real dot uses the MXU."""
    def cos(a_ref, n_ref, n2_ref):
        a = a_ref[...]                                                   # native dtype -> MXU
        n = n_ref[...]
        dots = lax.dot_general(a, n, (((1,), (1,)), ((), ())),
                               preferred_element_type=jnp.float32)       # [TR, Bn]
        a32 = a.astype(jnp.float32)
        w1 = jnp.sum(a32 * a32, axis=-1, keepdims=True)                  # [TR, 1]
        denom = jnp.sqrt(jnp.maximum(w1 * n2_ref[...], eps2))            # VPU broadcast
        return dots / denom

    so_ref[...] = cos(sa_ref, sn_ref, sn2_ref).astype(so_ref.dtype)
    to_ref[...] = cos(ta_ref, tn_ref, tn2_ref).astype(to_ref.dtype)


# --------------------------------------------------------------------------------------
# pallas_call wrappers
# --------------------------------------------------------------------------------------
def _fused_logit_sums(s_logits, t_logits, tgt_rows, itemp_rows, nmask_rows, tfmask_rows):
    r, c = s_logits.shape
    bytes_per_row = (s_logits.dtype.itemsize + t_logits.dtype.itemsize) * c + 4 * 4
    tile, r_pad = _choose_row_tile(r, bytes_per_row)

    s_p = _pad_rows(s_logits, r_pad)                      # native dtype, no upcast
    t_p = _pad_rows(t_logits, r_pad)
    tgt_p = _pad_rows(tgt_rows.reshape(r, 1).astype(jnp.int32), r_pad)
    it_p = _pad_rows(itemp_rows.reshape(r, 1).astype(jnp.float32), r_pad, value=1.0)
    nm_p = _pad_rows(nmask_rows.reshape(r, 1).astype(jnp.float32), r_pad)
    tf_p = _pad_rows(tfmask_rows.reshape(r, 1).astype(jnp.float32), r_pad)

    col_spec = pl.BlockSpec((tile, 1), lambda i: (i, 0))
    ce, kl, tf = pl.pallas_call(
        _fused_logit_kernel,
        out_shape=tuple(jax.ShapeDtypeStruct((1, 1), jnp.float32) for _ in range(3)),
        grid_spec=pltpu.PrefetchScalarGridSpec(
            num_scalar_prefetch=0,
            grid=(r_pad // tile,),
            in_specs=[
                pl.BlockSpec((tile, c), lambda i: (i, 0)),
                pl.BlockSpec((tile, c), lambda i: (i, 0)),
                col_spec, col_spec, col_spec, col_spec,
            ],
            out_specs=tuple(pl.BlockSpec((1, 1), lambda i: (0, 0)) for _ in range(3)),
            scratch_shapes=[pltpu.VMEM((tile, 1), jnp.float32)] * 3,
        ),
        compiler_params=pltpu.CompilerParams(dimension_semantics=("arbitrary",)),
    )(s_p, t_p, tgt_p, it_p, nm_p, tf_p)
    return ce[0, 0], kl[0, 0], tf[0, 0]


def _masked_kl_sum(s_logits, t_logits, row_mask, temp):
    r, c = s_logits.shape
    bytes_per_row = (s_logits.dtype.itemsize + t_logits.dtype.itemsize) * c + 4
    tile, r_pad = _choose_row_tile(r, bytes_per_row)
    s_p = _pad_rows(s_logits, r_pad)
    t_p = _pad_rows(t_logits, r_pad)
    m_p = _pad_rows(row_mask.astype(jnp.float32).reshape(r, 1), r_pad)
    out = pl.pallas_call(
        functools.partial(_masked_kl_kernel, float(1.0 / temp)),
        out_shape=jax.ShapeDtypeStruct((1, 1), jnp.float32),
        grid_spec=pltpu.PrefetchScalarGridSpec(
            num_scalar_prefetch=0,
            grid=(r_pad // tile,),
            in_specs=[
                pl.BlockSpec((tile, c), lambda i: (i, 0)),
                pl.BlockSpec((tile, c), lambda i: (i, 0)),
                pl.BlockSpec((tile, 1), lambda i: (i, 0)),
            ],
            out_specs=pl.BlockSpec((1, 1), lambda i: (0, 0)),
            scratch_shapes=[pltpu.VMEM((tile, 1), jnp.float32)],
        ),
        compiler_params=pltpu.CompilerParams(dimension_semantics=("arbitrary",)),
    )(s_p, t_p, m_p)
    return out[0, 0]


def _cosine_similarity_matrices(s_aug, s_norm, t_aug, t_norm):
    ba, d = s_aug.shape
    bn = s_norm.shape[0]
    bytes_per_row = (s_aug.dtype.itemsize + t_aug.dtype.itemsize) * d + 2 * bn * 4
    tile, r_pad = _choose_row_tile(ba, bytes_per_row)
    sa_p = _pad_rows(s_aug, r_pad)
    ta_p = _pad_rows(t_aug, r_pad)
    # normal-feature squared norms precomputed once, lane-dense (1, Bn) f32
    sn2 = jnp.sum(s_norm.astype(jnp.float32) ** 2, axis=1)[None, :]
    tn2 = jnp.sum(t_norm.astype(jnp.float32) ** 2, axis=1)[None, :]

    so, to = pl.pallas_call(
        functools.partial(_cosine_kernel, float(_COS_EPS) ** 2),
        out_shape=(jax.ShapeDtypeStruct((r_pad, bn), jnp.float32),
                   jax.ShapeDtypeStruct((r_pad, bn), jnp.float32)),
        grid_spec=pltpu.PrefetchScalarGridSpec(
            num_scalar_prefetch=0,
            grid=(r_pad // tile,),
            in_specs=[
                pl.BlockSpec((tile, d), lambda i: (i, 0)),
                pl.BlockSpec((bn, d), lambda i: (0, 0)),
                pl.BlockSpec((1, bn), lambda i: (0, 0)),
                pl.BlockSpec((tile, d), lambda i: (i, 0)),
                pl.BlockSpec((bn, d), lambda i: (0, 0)),
                pl.BlockSpec((1, bn), lambda i: (0, 0)),
            ],
            out_specs=(pl.BlockSpec((tile, bn), lambda i: (i, 0)),
                       pl.BlockSpec((tile, bn), lambda i: (i, 0))),
        ),
        compiler_params=pltpu.CompilerParams(dimension_semantics=("parallel",)),
    )(sa_p, s_norm, sn2, ta_p, t_norm, tn2)
    return so[:ba], to[:ba]


# --------------------------------------------------------------------------------------
# rank-based row selection (data dependent -> fixed-shape mask, plain JAX)
# --------------------------------------------------------------------------------------
def _target_rank(score_matrix, target_cols):
    """0-based position of the target column in a descending sort along axis=1."""
    order = jnp.argsort(-score_matrix, axis=1)
    return jnp.argmax((order == target_cols[:, None]).astype(jnp.int32), axis=1)


def _rank_select_mask(ranks, ratio):
    """SSKD error-level selection: keep all rank-0 rows plus floor(ratio * #wrong) wrong rows
    with the smallest ranks.  Returns (mask [R,1] f32, keep count)."""
    r = ranks.shape[0]
    sort_idx = jnp.argsort(ranks)            # stable ascending
    pos = jnp.argsort(sort_idx)              # position of each row in the sorted order
    wrong_num = jnp.sum(ranks != 0)
    correct_num = r - wrong_num
    wrong_keep = jnp.floor(wrong_num.astype(jnp.float32) * ratio).astype(jnp.int32)
    keep = correct_num + wrong_keep
    mask = (pos < keep).astype(jnp.float32)[:, None]
    return mask, keep


# --------------------------------------------------------------------------------------
# SSKD loss
# --------------------------------------------------------------------------------------
def _sskd_loss_core(student_linear, teacher_linear, student_ss, teacher_ss, targets,
                    kl_temp, ss_temp, tf_temp, ss_ratio, tf_ratio, loss_weights):
    batch_size, num_classes = student_linear.shape
    if batch_size % 4 != 0:
        raise ValueError("SSKDLoss expects a batch size divisible by 4")
    quarter = batch_size // 4                 # number of "normal" (non-augmented) samples
    three_forth = 3 * quarter

    # ---- tf-branch rank selection (plain JAX argsort; order-preserving vs softmax) ---
    t_aug = teacher_linear.reshape(quarter, 4, num_classes)[:, 1:, :] \
                          .reshape(three_forth, num_classes)            # strided slice, no gather
    aug_targets = jnp.repeat(targets.astype(jnp.int32), 3)
    ranks_tf = _target_rank(t_aug, aug_targets)
    mask_tf_aug, keep_tf = _rank_select_mask(ranks_tf, tf_ratio)

    # ---- fused CE + KL + tf-KL over the full [B, C] logits ---------------------------
    is_normal = (jnp.arange(batch_size) % 4) == 0
    nmask = is_normal.astype(jnp.float32)
    tfmask = jnp.concatenate(
        [jnp.zeros((quarter, 1), jnp.float32), mask_tf_aug.reshape(quarter, 3)], axis=1
    ).reshape(batch_size)
    itemp = jnp.where(is_normal, 1.0 / kl_temp, 1.0 / tf_temp).astype(jnp.float32)
    tgt_rows = jnp.repeat(targets.astype(jnp.int32), 4)

    ce_sum, kl_sum, tf_sum = _fused_logit_sums(
        student_linear, teacher_linear, tgt_rows, itemp, nmask, tfmask)
    ce_loss = ce_sum / quarter
    kl_loss = (kl_sum / quarter) * (kl_temp ** 2)
    tf_loss = (tf_sum / jnp.maximum(keep_tf, 1).astype(jnp.float32)) * (tf_temp ** 2)

    # ---- ss branch: cosine-similarity matrices + rank-selected KL --------------------
    feat_dim = student_ss.shape[1]
    s_grp = student_ss.reshape(quarter, 4, feat_dim)
    t_grp = teacher_ss.reshape(quarter, 4, feat_dim)
    s_cos, t_cos = _cosine_similarity_matrices(
        s_grp[:, 1:, :].reshape(three_forth, feat_dim), s_grp[:, 0, :],
        t_grp[:, 1:, :].reshape(three_forth, feat_dim), t_grp[:, 0, :])
    t_cos = lax.stop_gradient(t_cos)
    ss_targets = jnp.repeat(jnp.arange(quarter, dtype=jnp.int32), 3)
    ranks_ss = _target_rank(t_cos, ss_targets)
    mask_ss, keep_ss = _rank_select_mask(ranks_ss, ss_ratio)
    ss_sum = _masked_kl_sum(s_cos, t_cos, mask_ss, ss_temp)
    ss_loss = (ss_sum / jnp.maximum(keep_ss, 1).astype(jnp.float32)) * (ss_temp ** 2)

    w = loss_weights
    return w[0] * ce_loss + w[1] * kl_loss + w[2] * ss_loss + w[3] * tf_loss


class SSKDLoss:
    """JAX/Pallas port of torchdistill SSKDLoss forward."""

    def __init__(self, student_linear_module_path, teacher_linear_module_path,
                 student_ss_module_path, teacher_ss_module_path,
                 kl_temp, ss_temp, tf_temp, ss_ratio, tf_ratio,
                 student_linear_module_io='output', teacher_linear_module_io='output',
                 student_ss_module_io='output', teacher_ss_module_io='output',
                 loss_weights=None, reduction='batchmean', **kwargs):
        if reduction != 'batchmean':
            # TODO(synk): only the default 'batchmean' KLDivLoss reduction is implemented.
            raise NotImplementedError("only reduction='batchmean' is supported")
        self.loss_weights = [1.0, 1.0, 1.0, 1.0] if loss_weights is None else list(loss_weights)
        self.kl_temp = float(kl_temp)
        self.ss_temp = float(ss_temp)
        self.tf_temp = float(tf_temp)
        self.ss_ratio = float(ss_ratio)
        self.tf_ratio = float(tf_ratio)
        self.student_linear_module_path = student_linear_module_path
        self.student_linear_module_io = student_linear_module_io
        self.teacher_linear_module_path = teacher_linear_module_path
        self.teacher_linear_module_io = teacher_linear_module_io
        self.student_ss_module_path = student_ss_module_path
        self.student_ss_module_io = student_ss_module_io
        self.teacher_ss_module_path = teacher_ss_module_path
        self.teacher_ss_module_io = teacher_ss_module_io
        self._loss_fn = jax.jit(functools.partial(
            _sskd_loss_core,
            kl_temp=self.kl_temp, ss_temp=self.ss_temp, tf_temp=self.tf_temp,
            ss_ratio=self.ss_ratio, tf_ratio=self.tf_ratio,
            loss_weights=tuple(float(x) for x in self.loss_weights)))

    def __call__(self, student_io_dict, teacher_io_dict, targets, *args, **kwargs):
        s_lin = student_io_dict[self.student_linear_module_path][self.student_linear_module_io]
        t_lin = teacher_io_dict[self.teacher_linear_module_path][self.teacher_linear_module_io]
        s_ss = student_io_dict[self.student_ss_module_path][self.student_ss_module_io]
        t_ss = teacher_io_dict[self.teacher_ss_module_path][self.teacher_ss_module_io]
        return self._loss_fn(s_lin, t_lin, s_ss, t_ss, targets)


# --------------------------------------------------------------------------------------
# pure-JAX reference (mirrors the PyTorch forward) for checking
# --------------------------------------------------------------------------------------
def _ref_sskd_loss(student_linear, teacher_linear, student_ss, teacher_ss, targets,
                   kl_temp, ss_temp, tf_temp, ss_ratio, tf_ratio, loss_weights):
    batch_size, _ = student_linear.shape
    three_forth = (batch_size * 3) // 4
    one_forth = batch_size - three_forth
    normal_idx = np.arange(0, batch_size, 4)
    aug_idx = np.array([i for i in range(batch_size) if i % 4 != 0])

    def kl_batchmean(s_logits, t_logits, temp, row_mask=None, keep=None):
        log_q = jax.nn.log_softmax(s_logits / temp, axis=1)
        log_p = jax.nn.log_softmax(t_logits / temp, axis=1)
        kl_rows = jnp.sum(jnp.exp(log_p) * (log_p - log_q), axis=1)
        if row_mask is None:
            return jnp.sum(kl_rows) / s_logits.shape[0]
        return jnp.sum(kl_rows * row_mask) / keep

    s_norm, t_norm = student_linear[normal_idx], teacher_linear[normal_idx]
    log_p_s = jax.nn.log_softmax(s_norm, axis=1)
    ce_loss = jnp.mean(-jnp.take_along_axis(log_p_s, targets[:, None], axis=1))
    kl_loss = kl_batchmean(s_norm, t_norm, kl_temp) * kl_temp ** 2

    s_aug, t_aug = student_linear[aug_idx], teacher_linear[aug_idx]
    aug_targets = jnp.repeat(targets, 3)[:three_forth]
    ranks_tf = _target_rank(jax.nn.softmax(t_aug / tf_temp, axis=1), aug_targets)
    mask_tf, keep_tf = _rank_select_mask(ranks_tf, tf_ratio)
    tf_loss = kl_batchmean(s_aug, t_aug, tf_temp, mask_tf[:, 0],
                           jnp.maximum(keep_tf, 1).astype(jnp.float32)) * tf_temp ** 2

    def cos_mat(aug, nor):
        w12 = aug @ nor.T
        w1 = jnp.sum(aug * aug, axis=1, keepdims=True)
        w2 = jnp.sum(nor * nor, axis=1, keepdims=True)
        return w12 / jnp.sqrt(jnp.maximum(w1 * w2.T, _COS_EPS ** 2))

    s_cos = cos_mat(student_ss[aug_idx], student_ss[normal_idx])
    t_cos = cos_mat(teacher_ss[aug_idx], teacher_ss[normal_idx])
    ss_targets = jnp.repeat(jnp.arange(one_forth, dtype=jnp.int32), 3)[:three_forth]
    ranks_ss = _target_rank(t_cos, ss_targets)
    mask_ss, keep_ss = _rank_select_mask(ranks_ss, ss_ratio)
    ss_loss = kl_batchmean(s_cos, t_cos, ss_temp, mask_ss[:, 0],
                           jnp.maximum(keep_ss, 1).astype(jnp.float32)) * ss_temp ** 2

    w = loss_weights
    return w[0] * ce_loss + w[1] * kl_loss + w[2] * ss_loss + w[3] * tf_loss


if __name__ == "__main__":
    key = jax.random.PRNGKey(0)
    k1, k2, k3, k4, k5 = jax.random.split(key, 5)

    batch_size, num_classes, feat_dim = 8, 32, 32
    one_forth = batch_size - (batch_size * 3) // 4

    student_linear = jax.random.normal(k1, (batch_size, num_classes), jnp.float32)
    teacher_linear = jax.random.normal(k2, (batch_size, num_classes), jnp.float32)
    student_ss = jax.random.normal(k3, (batch_size, feat_dim), jnp.float32)
    teacher_ss = jax.random.normal(k4, (batch_size, feat_dim), jnp.float32)
    targets = jax.random.randint(k5, (one_forth,), 0, num_classes, jnp.int32)

    student_io_dict = {"model.fc": {"output": student_linear},
                       "ss_module": {"output": student_ss}}
    teacher_io_dict = {"model.fc": {"output": teacher_linear},
                       "ss_module": {"output": teacher_ss}}

    loss_fn = SSKDLoss(
        student_linear_module_path="model.fc", teacher_linear_module_path="model.fc",
        student_ss_module_path="ss_module", teacher_ss_module_path="ss_module",
        kl_temp=4.0, ss_temp=0.5, tf_temp=4.0, ss_ratio=0.75, tf_ratio=1.0,
        loss_weights=[1.0, 0.9, 10.0, 2.7], reduction="batchmean")

    out = loss_fn(student_io_dict, teacher_io_dict, targets)
    out = jax.block_until_ready(out)

    ref = _ref_sskd_loss(student_linear, teacher_linear, student_ss, teacher_ss, targets,
                         4.0, 0.5, 4.0, 0.75, 1.0, (1.0, 0.9, 10.0, 2.7))
    ref = jax.block_until_ready(ref)

    if bool(jnp.allclose(out, ref, rtol=1e-4, atol=1e-5)):
        print("KERNEL_OK")
    else:
        print(f"MISMATCH: kernel={out} ref={ref}")
</pallas_src>

<mosaic_0001>
module attributes {stable_mosaic.version = 11 : i64} {
  func.func @_cosine_kernel(%arg0: i32, %arg1: memref<8x32xf32, #tpu.memory_space<vmem>>, %arg2: memref<2x32xf32, #tpu.memory_space<vmem>>, %arg3: memref<1x2xf32, #tpu.memory_space<vmem>>, %arg4: memref<8x32xf32, #tpu.memory_space<vmem>>, %arg5: memref<2x32xf32, #tpu.memory_space<vmem>>, %arg6: memref<1x2xf32, #tpu.memory_space<vmem>>, %arg7: memref<8x2xf32, #tpu.memory_space<vmem>>, %arg8: memref<8x2xf32, #tpu.memory_space<vmem>>) attributes {dimension_semantics = [#tpu.dimension_semantics<parallel>], iteration_bounds = array<i64: 1>, scalar_prefetch = 0 : i64, scratch_operands = 0 : i64, tpu.core_type = #tpu.core_type<tc>, window_params = [{transform_indices = @transform_0, window_bounds = array<i64: 8, 32>}, {pipeline_mode = #tpu.pipeline_mode<synchronous>, transform_indices = @transform_1, window_bounds = array<i64: 2, 32>}, {pipeline_mode = #tpu.pipeline_mode<synchronous>, transform_indices = @transform_2, window_bounds = array<i64: 1, 2>}, {transform_indices = @transform_3, window_bounds = array<i64: 8, 32>}, {pipeline_mode = #tpu.pipeline_mode<synchronous>, transform_indices = @transform_4, window_bounds = array<i64: 2, 32>}, {pipeline_mode = #tpu.pipeline_mode<synchronous>, transform_indices = @transform_5, window_bounds = array<i64: 1, 2>}, {transform_indices = @transform_6, window_bounds = array<i64: 8, 2>}, {transform_indices = @transform_7, window_bounds = array<i64: 8, 2>}]} {
    %c0 = arith.constant 0 : index
    %c0_0 = arith.constant 0 : index
    %0 = vector.load %arg1[%c0, %c0_0] : memref<8x32xf32, #tpu.memory_space<vmem>>, vector<8x32xf32>
    %c0_1 = arith.constant 0 : index
    %c0_2 = arith.constant 0 : index
    %1 = vector.load %arg2[%c0_1, %c0_2] : memref<2x32xf32, #tpu.memory_space<vmem>>, vector<2x32xf32>
    %cst = arith.constant dense<0.000000e+00> : vector<8x2xf32>
    %2 = tpu.matmul %0, %1, %cst {dimension_numbers = #tpu.dot_dimension_numbers<[1], [1], [0], [0], [0, 0, 1, 0], [], []>} : vector<8x32xf32>, vector<2x32xf32>, vector<8x2xf32> -> vector<8x2xf32>
    %3 = arith.mulf %0, %0 : vector<8x32xf32>
    %cst_3 = arith.constant dense<0.000000e+00> : vector<8xf32>
    %4 = vector.multi_reduction <add>, %3, %cst_3 [1] : vector<8x32xf32> to vector<8xf32>
    %5 = vector.shape_cast %4 : vector<8xf32> to vector<8x1xf32>
    %c0_4 = arith.constant 0 : index
    %c0_5 = arith.constant 0 : index
    %6 = vector.load %arg3[%c0_4, %c0_5] : memref<1x2xf32, #tpu.memory_space<vmem>>, vector<1x2xf32>
    %7 = vector.broadcast %5 : vector<8x1xf32> to vector<8x2xf32>
    %8 = vector.broadcast %6 : vector<1x2xf32> to vector<8x2xf32>
    %9 = arith.mulf %7, %8 : vector<8x2xf32>
    %cst_6 = arith.constant 1.000000e-16 : f32
    %10 = vector.broadcast %cst_6 : f32 to vector<8x2xf32>
    %11 = arith.maximumf %9, %10 : vector<8x2xf32>
    %12 = math.sqrt %11 : vector<8x2xf32>
    %13 = arith.divf %2, %12 : vector<8x2xf32>
    %c0_7 = arith.constant 0 : index
    %c0_8 = arith.constant 0 : index
    %14 = vector.load %arg7[%c0_7, %c0_8] : memref<8x2xf32, #tpu.memory_space<vmem>>, vector<8x2xf32>
    tpu.vector_store %arg7[%c0_7, %c0_8], %13 {strides = array<i32>} : memref<8x2xf32, #tpu.memory_space<vmem>>, vector<8x2xf32>,
    %c0_9 = arith.constant 0 : index
    %c0_10 = arith.constant 0 : index
    %15 = vector.load %arg4[%c0_9, %c0_10] : memref<8x32xf32, #tpu.memory_space<vmem>>, vector<8x32xf32>
    %c0_11 = arith.constant 0 : index
    %c0_12 = arith.constant 0 : index
    %16 = vector.load %arg5[%c0_11, %c0_12] : memref<2x32xf32, #tpu.memory_space<vmem>>, vector<2x32xf32>
    %cst_13 = arith.constant dense<0.000000e+00> : vector<8x2xf32>
    %17 = tpu.matmul %15, %16, %cst_13 {dimension_numbers = #tpu.dot_dimension_numbers<[1], [1], [0], [0], [0, 0, 1, 0], [], []>} : vector<8x32xf32>, vector<2x32xf32>, vector<8x2xf32> -> vector<8x2xf32>
    %18 = arith.mulf %15, %15 : vector<8x32xf32>
    %cst_14 = arith.constant dense<0.000000e+00> : vector<8xf32>
    %19 = vector.multi_reduction <add>, %18, %cst_14 [1] : vector<8x32xf32> to vector<8xf32>
    %20 = vector.shape_cast %19 : vector<8xf32> to vector<8x1xf32>
    %c0_15 = arith.constant 0 : index
    %c0_16 = arith.constant 0 : index
    %21 = vector.load %arg6[%c0_15, %c0_16] : memref<1x2xf32, #tpu.memory_space<vmem>>, vector<1x2xf32>
    %22 = vector.broadcast %20 : vector<8x1xf32> to vector<8x2xf32>
    %23 = vector.broadcast %21 : vector<1x2xf32> to vector<8x2xf32>
    %24 = arith.mulf %22, %23 : vector<8x2xf32>
    %cst_17 = arith.constant 1.000000e-16 : f32
    %25 = vector.broadcast %cst_17 : f32 to vector<8x2xf32>
    %26 = arith.maximumf %24, %25 : vector<8x2xf32>
    %27 = math.sqrt %26 : vector<8x2xf32>
    %28 = arith.divf %17, %27 : vector<8x2xf32>
    %c0_18 = arith.constant 0 : index
    %c0_19 = arith.constant 0 : index
    %29 = vector.load %arg8[%c0_18, %c0_19] : memref<8x2xf32, #tpu.memory_space<vmem>>, vector<8x2xf32>
    tpu.vector_store %arg8[%c0_18, %c0_19], %28 {strides = array<i32>} : memref<8x2xf32, #tpu.memory_space<vmem>>, vector<8x2xf32>,
    return
  }
  func.func @transform_0(%arg0: i32) -> (i32, i32) {
    %c0_i32 = arith.constant 0 : i32
    %c0_i32_0 = arith.constant 0 : i32
    return %arg0, %c0_i32 : i32, i32
  }
  func.func @transform_1(%arg0: i32) -> (i32, i32) {
    %c0_i32 = arith.constant 0 : i32
    %c0_i32_0 = arith.constant 0 : i32
    %c0_i32_1 = arith.constant 0 : i32
    return %c0_i32, %c0_i32_0 : i32, i32
  }
  func.func @transform_2(%arg0: i32) -> (i32, i32) {
    %c0_i32 = arith.constant 0 : i32
    %c0_i32_0 = arith.constant 0 : i32
    %c0_i32_1 = arith.constant 0 : i32
    return %c0_i32, %c0_i32_0 : i32, i32
  }
  func.func @transform_3(%arg0: i32) -> (i32, i32) {
    %c0_i32 = arith.constant 0 : i32
    %c0_i32_0 = arith.constant 0 : i32
    return %arg0, %c0_i32 : i32, i32
  }
  func.func @transform_4(%arg0: i32) -> (i32, i32) {
    %c0_i32 = arith.constant 0 : i32
    %c0_i32_0 = arith.constant 0 : i32
    %c0_i32_1 = arith.constant 0 : i32
    return %c0_i32, %c0_i32_0 : i32, i32
  }
  func.func @transform_5(%arg0: i32) -> (i32, i32) {
    %c0_i32 = arith.constant 0 : i32
    %c0_i32_0 = arith.constant 0 : i32
    %c0_i32_1 = arith.constant 0 : i32
    return %c0_i32, %c0_i32_0 : i32, i32
  }
  func.func @transform_6(%arg0: i32) -> (i32, i32) {
    %c0_i32 = arith.constant 0 : i32
    %c0_i32_0 = arith.constant 0 : i32
    return %arg0, %c0_i32 : i32, i32
  }
  func.func @transform_7(%arg0: i32) -> (i32, i32) {
    %c0_i32 = arith.constant 0 : i32
    %c0_i32_0 = arith.constant 0 : i32
    return %arg0, %c0_i32 : i32, i32
  }
}

module attributes {stable_mosaic.version = 11 : i64} {
  func.func @_masked_kl_kernel(%arg0: i32, %arg1: memref<8x2xf32, #tpu.memory_space<vmem>>, %arg2: memref<8x2xf32, #tpu.memory_space<vmem>>, %arg3: memref<8x1xf32, #tpu.memory_space<vmem>>, %arg4: memref<1x1xf32, #tpu.memory_space<vmem>>, %arg5: memref<8x1xf32, #tpu.memory_space<vmem>>) attributes {dimension_semantics = [#tpu.dimension_semantics<arbitrary>], iteration_bounds = array<i64: 1>, scalar_prefetch = 0 : i64, scratch_operands = 1 : i64, tpu.core_type = #tpu.core_type<tc>, window_params = [{transform_indices = @transform_0, window_bounds = array<i64: 8, 2>}, {transform_indices = @transform_1, window_bounds = array<i64: 8, 2>}, {transform_indices = @transform_2, window_bounds = array<i64: 8, 1>}, {pipeline_mode = #tpu.pipeline_mode<synchronous>, transform_indices = @transform_3, window_bounds = array<i64: 1, 1>}]} {
    %c0_i32 = arith.constant 0 : i32
    %0 = arith.cmpi eq, %arg0, %c0_i32 : i32
    %1 = arith.extui %0 : i1 to i32
    %c0_i32_0 = arith.constant 0 : i32
    %2 = arith.cmpi ne, %1, %c0_i32_0 : i32
    scf.if %2 {
      %cst_19 = arith.constant 0.000000e+00 : f32
      %45 = vector.broadcast %cst_19 : f32 to vector<8x1xf32>
      %c0_20 = arith.constant 0 : index
      %c0_21 = arith.constant 0 : index
      %46 = vector.load %arg5[%c0_20, %c0_21] : memref<8x1xf32, #tpu.memory_space<vmem>>, vector<8x1xf32>
      tpu.vector_store %arg5[%c0_20, %c0_21], %45 {strides = array<i32>} : memref<8x1xf32, #tpu.memory_space<vmem>>, vector<8x1xf32>,
    } else {
    }
    %c0 = arith.constant 0 : index
    %c0_1 = arith.constant 0 : index
    %3 = vector.load %arg1[%c0, %c0_1] : memref<8x2xf32, #tpu.memory_space<vmem>>, vector<8x2xf32>
    %cst = arith.constant 2.000000e+00 : f32
    %4 = vector.broadcast %cst : f32 to vector<8x2xf32>
    %5 = arith.mulf %3, %4 : vector<8x2xf32>
    %c0_2 = arith.constant 0 : index
    %c0_3 = arith.constant 0 : index
    %6 = vector.load %arg2[%c0_2, %c0_3] : memref<8x2xf32, #tpu.memory_space<vmem>>, vector<8x2xf32>
    %cst_4 = arith.constant 2.000000e+00 : f32
    %7 = vector.broadcast %cst_4 : f32 to vector<8x2xf32>
    %8 = arith.mulf %6, %7 : vector<8x2xf32>
    %c0_5 = arith.constant 0 : index
    %c0_6 = arith.constant 0 : index
    %9 = vector.load %arg3[%c0_5, %c0_6] : memref<8x1xf32, #tpu.memory_space<vmem>>, vector<8x1xf32>
    %cst_7 = arith.constant dense<0xFF800000> : vector<8xf32>
    %10 = vector.multi_reduction <maximumf>, %5, %cst_7 [1] : vector<8x2xf32> to vector<8xf32>
    %11 = vector.shape_cast %10 : vector<8xf32> to vector<8x1xf32>
    %12 = vector.broadcast %11 : vector<8x1xf32> to vector<8x2xf32>
    %13 = arith.subf %5, %12 : vector<8x2xf32>
    %14 = math.exp %13 : vector<8x2xf32>
    %cst_8 = arith.constant dense<0.000000e+00> : vector<8xf32>
    %15 = vector.multi_reduction <add>, %14, %cst_8 [1] : vector<8x2xf32> to vector<8xf32>
    %16 = vector.shape_cast %15 : vector<8xf32> to vector<8x1xf32>
    %17 = math.log %16 : vector<8x1xf32>
    %18 = vector.broadcast %17 : vector<8x1xf32> to vector<8x2xf32>
    %19 = arith.subf %13, %18 : vector<8x2xf32>
    %cst_9 = arith.constant dense<0xFF800000> : vector<8xf32>
    %20 = vector.multi_reduction <maximumf>, %8, %cst_9 [1] : vector<8x2xf32> to vector<8xf32>
    %21 = vector.shape_cast %20 : vector<8xf32> to vector<8x1xf32>
    %22 = vector.broadcast %21 : vector<8x1xf32> to vector<8x2xf32>
    %23 = arith.subf %8, %22 : vector<8x2xf32>
    %24 = math.exp %23 : vector<8x2xf32>
    %cst_10 = arith.constant dense<0.000000e+00> : vector<8xf32>
    %25 = vector.multi_reduction <add>, %24, %cst_10 [1] : vector<8x2xf32> to vector<8xf32>
    %26 = vector.shape_cast %25 : vector<8xf32> to vector<8x1xf32>
    %27 = math.log %26 : vector<8x1xf32>
    %28 = vector.broadcast %27 : vector<8x1xf32> to vector<8x2xf32>
    %29 = arith.subf %23, %28 : vector<8x2xf32>
    %cst_11 = arith.constant 1.000000e+00 : f32
    %30 = vector.broadcast %cst_11 : f32 to vector<8x1xf32>
    %31 = arith.divf %30, %26 : vector<8x1xf32>
    %32 = vector.broadcast %31 : vector<8x1xf32> to vector<8x2xf32>
    %33 = arith.mulf %24, %32 : vector<8x2xf32>
    %34 = arith.subf %29, %19 : vector<8x2xf32>
    %35 = arith.mulf %33, %34 : vector<8x2xf32>
    %cst_12 = arith.constant dense<0.000000e+00> : vector<8xf32>
    %36 = vector.multi_reduction <add>, %35, %cst_12 [1] : vector<8x2xf32> to vector<8xf32>
    %37 = vector.shape_cast %36 : vector<8xf32> to vector<8x1xf32>
    %c0_13 = arith.constant 0 : index
    %c0_14 = arith.constant 0 : index
    %38 = vector.load %arg5[%c0_13, %c0_14] : memref<8x1xf32, #tpu.memory_space<vmem>>, vector<8x1xf32>
    %39 = arith.mulf %37, %9 : vector<8x1xf32>
    %40 = arith.addf %38, %39 : vector<8x1xf32>
    %c0_15 = arith.constant 0 : index
    %c0_16 = arith.constant 0 : index
    %41 = vector.load %arg5[%c0_15, %c0_16] : memref<8x1xf32, #tpu.memory_space<vmem>>, vector<8x1xf32>
    tpu.vector_store %arg5[%c0_15, %c0_16], %40 {strides = array<i32>} : memref<8x1xf32, #tpu.memory_space<vmem>>, vector<8x1xf32>,
    %c0_i32_17 = arith.constant 0 : i32
    %42 = arith.cmpi eq, %arg0, %c0_i32_17 : i32
    %43 = arith.extui %42 : i1 to i32
    %c0_i32_18 = arith.constant 0 : i32
    %44 = arith.cmpi ne, %43, %c0_i32_18 : i32
    scf.if %44 {
      %c0_19 = arith.constant 0 : index
      %c0_20 = arith.constant 0 : index
      %45 = vector.load %arg5[%c0_19, %c0_20] : memref<8x1xf32, #tpu.memory_space<vmem>>, vector<8x1xf32>
      %46 = vector.shape_cast %45 : vector<8x1xf32> to vector<1x8x1xf32>
      %cst_21 = arith.constant dense<0.000000e+00> : vector<1xf32>
      %47 = vector.multi_reduction <add>, %46, %cst_21 [1, 2] : vector<1x8x1xf32> to vector<1xf32>
      %48 = vector.shape_cast %47 : vector<1xf32> to vector<1x1x1xf32>
      %49 = vector.extract %48[0, 0, 0] : f32 from vector<1x1x1xf32>
      %50 = vector.broadcast %49 : f32 to vector<1x1xf32>
      %c0_22 = arith.constant 0 : index
      %c0_23 = arith.constant 0 : index
      %51 = vector.load %arg4[%c0_22, %c0_23] : memref<1x1xf32, #tpu.memory_space<vmem>>, vector<1x1xf32>
      tpu.vector_store %arg4[%c0_22, %c0_23], %50 {strides = array<i32>} : memref<1x1xf32, #tpu.memory_space<vmem>>, vector<1x1xf32>,
    } else {
    }
    return
  }
  func.func @transform_0(%arg0: i32) -> (i32, i32) {
    %c0_i32 = arith.constant 0 : i32
    %c0_i32_0 = arith.constant 0 : i32
    return %arg0, %c0_i32 : i32, i32
  }
  func.func @transform_1(%arg0: i32) -> (i32, i32) {
    %c0_i32 = arith.constant 0 : i32
    %c0_i32_0 = arith.constant 0 : i32
    return %arg0, %c0_i32 : i32, i32
  }
  func.func @transform_2(%arg0: i32) -> (i32, i32) {
    %c0_i32 = arith.constant 0 : i32
    %c0_i32_0 = arith.constant 0 : i32
    return %arg0, %c0_i32 : i32, i32
  }
  func.func @transform_3(%arg0: i32) -> (i32, i32) {
    %c0_i32 = arith.constant 0 : i32
    %c0_i32_0 = arith.constant 0 : i32
    %c0_i32_1 = arith.constant 0 : i32
    return %c0_i32, %c0_i32_0 : i32, i32
  }
}

module attributes {stable_mosaic.version = 11 : i64} {
  func.func @_fused_logit_kernel(%arg0: i32, %arg1: memref<8x32xf32, #tpu.memory_space<vmem>>, %arg2: memref<8x32xf32, #tpu.memory_space<vmem>>, %arg3: memref<8x1xi32, #tpu.memory_space<vmem>>, %arg4: memref<8x1xf32, #tpu.memory_space<vmem>>, %arg5: memref<8x1xf32, #tpu.memory_space<vmem>>, %arg6: memref<8x1xf32, #tpu.memory_space<vmem>>, %arg7: memref<1x1xf32, #tpu.memory_space<vmem>>, %arg8: memref<1x1xf32, #tpu.memory_space<vmem>>, %arg9: memref<1x1xf32, #tpu.memory_space<vmem>>, %arg10: memref<8x1xf32, #tpu.memory_space<vmem>>, %arg11: memref<8x1xf32, #tpu.memory_space<vmem>>, %arg12: memref<8x1xf32, #tpu.memory_space<vmem>>) attributes {dimension_semantics = [#tpu.dimension_semantics<arbitrary>], iteration_bounds = array<i64: 1>, scalar_prefetch = 0 : i64, scratch_operands = 3 : i64, tpu.core_type = #tpu.core_type<tc>, window_params = [{transform_indices = @transform_0, window_bounds = array<i64: 8, 32>}, {transform_indices = @transform_1, window_bounds = array<i64: 8, 32>}, {transform_indices = @transform_2, window_bounds = array<i64: 8, 1>}, {transform_indices = @transform_3, window_bounds = array<i64: 8, 1>}, {transform_indices = @transform_4, window_bounds = array<i64: 8, 1>}, {transform_indices = @transform_5, window_bounds = array<i64: 8, 1>}, {pipeline_mode = #tpu.pipeline_mode<synchronous>, transform_indices = @transform_6, window_bounds = array<i64: 1, 1>}, {pipeline_mode = #tpu.pipeline_mode<synchronous>, transform_indices = @transform_7, window_bounds = array<i64: 1, 1>}, {pipeline_mode = #tpu.pipeline_mode<synchronous>, transform_indices = @transform_8, window_bounds = array<i64: 1, 1>}]} {
    %c0_i32 = arith.constant 0 : i32
    %0 = arith.cmpi eq, %arg0, %c0_i32 : i32
    %1 = arith.extui %0 : i1 to i32
    %c0_i32_0 = arith.constant 0 : i32
    %2 = arith.cmpi ne, %1, %c0_i32_0 : i32
    scf.if %2 {
      %cst_36 = arith.constant 0.000000e+00 : f32
      %75 = vector.broadcast %cst_36 : f32 to vector<8x1xf32>
      %c0_37 = arith.constant 0 : index
      %c0_38 = arith.constant 0 : index
      %76 = vector.load %arg10[%c0_37, %c0_38] : memref<8x1xf32, #tpu.memory_space<vmem>>, vector<8x1xf32>
      tpu.vector_store %arg10[%c0_37, %c0_38], %75 {strides = array<i32>} : memref<8x1xf32, #tpu.memory_space<vmem>>, vector<8x1xf32>,
      %cst_39 = arith.constant 0.000000e+00 : f32
      %77 = vector.broadcast %cst_39 : f32 to vector<8x1xf32>
      %c0_40 = arith.constant 0 : index
      %c0_41 = arith.constant 0 : index
      %78 = vector.load %arg11[%c0_40, %c0_41] : memref<8x1xf32, #tpu.memory_space<vmem>>, vector<8x1xf32>
      tpu.vector_store %arg11[%c0_40, %c0_41], %77 {strides = array<i32>} : memref<8x1xf32, #tpu.memory_space<vmem>>, vector<8x1xf32>,
      %cst_42 = arith.constant 0.000000e+00 : f32
      %79 = vector.broadcast %cst_42 : f32 to vector<8x1xf32>
      %c0_43 = arith.constant 0 : index
      %c0_44 = arith.constant 0 : index
      %80 = vector.load %arg12[%c0_43, %c0_44] : memref<8x1xf32, #tpu.memory_space<vmem>>, vector<8x1xf32>
      tpu.vector_store %arg12[%c0_43, %c0_44], %79 {strides = array<i32>} : memref<8x1xf32, #tpu.memory_space<vmem>>, vector<8x1xf32>,
    } else {
    }
    %c0 = arith.constant 0 : index
    %c0_1 = arith.constant 0 : index
    %3 = vector.load %arg1[%c0, %c0_1] : memref<8x32xf32, #tpu.memory_space<vmem>>, vector<8x32xf32>
    %c0_2 = arith.constant 0 : index
    %c0_3 = arith.constant 0 : index
    %4 = vector.load %arg2[%c0_2, %c0_3] : memref<8x32xf32, #tpu.memory_space<vmem>>, vector<8x32xf32>
    %c0_4 = arith.constant 0 : index
    %c0_5 = arith.constant 0 : index
    %5 = vector.load %arg4[%c0_4, %c0_5] : memref<8x1xf32, #tpu.memory_space<vmem>>, vector<8x1xf32>
    %c0_6 = arith.constant 0 : index
    %c0_7 = arith.constant 0 : index
    %6 = vector.load %arg5[%c0_6, %c0_7] : memref<8x1xf32, #tpu.memory_space<vmem>>, vector<8x1xf32>
    %c0_8 = arith.constant 0 : index
    %c0_9 = arith.constant 0 : index
    %7 = vector.load %arg6[%c0_8, %c0_9] : memref<8x1xf32, #tpu.memory_space<vmem>>, vector<8x1xf32>
    %c0_10 = arith.constant 0 : index
    %c0_11 = arith.constant 0 : index
    %8 = vector.load %arg3[%c0_10, %c0_11] : memref<8x1xi32, #tpu.memory_space<vmem>>, vector<8x1xi32>
    %cst = arith.constant dense<0xFF800000> : vector<8xf32>
    %9 = vector.multi_reduction <maximumf>, %3, %cst [1] : vector<8x32xf32> to vector<8xf32>
    %10 = vector.shape_cast %9 : vector<8xf32> to vector<8x1xf32>
    %11 = vector.broadcast %10 : vector<8x1xf32> to vector<8x32xf32>
    %12 = arith.subf %3, %11 : vector<8x32xf32>
    %13 = math.exp %12 : vector<8x32xf32>
    %cst_12 = arith.constant dense<0.000000e+00> : vector<8xf32>
    %14 = vector.multi_reduction <add>, %13, %cst_12 [1] : vector<8x32xf32> to vector<8xf32>
    %15 = vector.shape_cast %14 : vector<8xf32> to vector<8x1xf32>
    %16 = math.log %15 : vector<8x1xf32>
    %17 = vector.broadcast %16 : vector<8x1xf32> to vector<8x32xf32>
    %18 = arith.subf %12, %17 : vector<8x32xf32>
    %19 = tpu.iota {dimensions = array<i32: 1>} : vector<8x32xi32>
    %20 = vector.broadcast %8 : vector<8x1xi32> to vector<8x32xi32>
    %21 = arith.cmpi eq, %19, %20 : vector<8x32xi32>
    %cst_13 = arith.constant 0.000000e+00 : f32
    %22 = vector.broadcast %cst_13 : f32 to vector<8x32xf32>
    %23 = arith.select %21, %18, %22 : vector<8x32xi1>, vector<8x32xf32>
    %cst_14 = arith.constant dense<0.000000e+00> : vector<8xf32>
    %24 = vector.multi_reduction <add>, %23, %cst_14 [1] : vector<8x32xf32> to vector<8xf32>
    %25 = vector.shape_cast %24 : vector<8xf32> to vector<8x1xf32>
    %cst_15 = arith.constant 0.000000e+00 : f32
    %26 = vector.broadcast %cst_15 : f32 to vector<8x1xf32>
    %27 = arith.subf %26, %25 : vector<8x1xf32>
    %28 = vector.broadcast %5 : vector<8x1xf32> to vector<8x32xf32>
    %29 = arith.mulf %3, %28 : vector<8x32xf32>
    %cst_16 = arith.constant dense<0xFF800000> : vector<8xf32>
    %30 = vector.multi_reduction <maximumf>, %29, %cst_16 [1] : vector<8x32xf32> to vector<8xf32>
    %31 = vector.shape_cast %30 : vector<8xf32> to vector<8x1xf32>
    %32 = vector.broadcast %31 : vector<8x1xf32> to vector<8x32xf32>
    %33 = arith.subf %29, %32 : vector<8x32xf32>
    %34 = math.exp %33 : vector<8x32xf32>
    %cst_17 = arith.constant dense<0.000000e+00> : vector<8xf32>
    %35 = vector.multi_reduction <add>, %34, %cst_17 [1] : vector<8x32xf32> to vector<8xf32>
    %36 = vector.shape_cast %35 : vector<8xf32> to vector<8x1xf32>
    %37 = math.log %36 : vector<8x1xf32>
    %38 = vector.broadcast %37 : vector<8x1xf32> to vector<8x32xf32>
    %39 = arith.subf %33, %38 : vector<8x32xf32>
    %40 = vector.broadcast %5 : vector<8x1xf32> to vector<8x32xf32>
    %41 = arith.mulf %4, %40 : vector<8x32xf32>
    %cst_18 = arith.constant dense<0xFF800000> : vector<8xf32>
    %42 = vector.multi_reduction <maximumf>, %41, %cst_18 [1] : vector<8x32xf32> to vector<8xf32>
    %43 = vector.shape_cast %42 : vector<8xf32> to vector<8x1xf32>
    %44 = vector.broadcast %43 : vector<8x1xf32> to vector<8x32xf32>
    %45 = arith.subf %41, %44 : vector<8x32xf32>
    %46 = math.exp %45 : vector<8x32xf32>
    %cst_19 = arith.constant dense<0.000000e+00> : vector<8xf32>
    %47 = vector.multi_reduction <add>, %46, %cst_19 [1] : vector<8x32xf32> to vector<8xf32>
    %48 = vector.shape_cast %47 : vector<8xf32> to vector<8x1xf32>
    %49 = math.log %48 : vector<8x1xf32>
    %50 = vector.broadcast %49 : vector<8x1xf32> to vector<8x32xf32>
    %51 = arith.subf %45, %50 : vector<8x32xf32>
    %cst_20 = arith.constant 1.000000e+00 : f32
    %52 = vector.broadcast %cst_20 : f32 to vector<8x1xf32>
    %53 = arith.divf %52, %48 : vector<8x1xf32>
    %54 = vector.broadcast %53 : vector<8x1xf32> to vector<8x32xf32>
    %55 = arith.mulf %46, %54 : vector<8x32xf32>
    %56 = arith.subf %51, %39 : vector<8x32xf32>
    %57 = arith.mulf %55, %56 : vector<8x32xf32>
    %cst_21 = arith.constant dense<0.000000e+00> : vector<8xf32>
    %58 = vector.multi_reduction <add>, %57, %cst_21 [1] : vector<8x32xf32> to vector<8xf32>
    %59 = vector.shape_cast %58 : vector<8xf32> to vector<8x1xf32>
    %c0_22 = arith.constant 0 : index
    %c0_23 = arith.constant 0 : index
    %60 = vector.load %arg10[%c0_22, %c0_23] : memref<8x1xf32, #tpu.memory_space<vmem>>, vector<8x1xf32>
    %61 = arith.mulf %27, %6 : vector<8x1xf32>
    %62 = arith.addf %60, %61 : vector<8x1xf32>
    %c0_24 = arith.constant 0 : index
    %c0_25 = arith.constant 0 : index
    %63 = vector.load %arg10[%c0_24, %c0_25] : memref<8x1xf32, #tpu.memory_space<vmem>>, vector<8x1xf32>
    tpu.vector_store %arg10[%c0_24, %c0_25], %62 {strides = array<i32>} : memref<8x1xf32, #tpu.memory_space<vmem>>, vector<8x1xf32>,
    %c0_26 = arith.constant 0 : index
    %c0_27 = arith.constant 0 : index
    %64 = vector.load %arg11[%c0_26, %c0_27] : memref<8x1xf32, #tpu.memory_space<vmem>>, vector<8x1xf32>
    %65 = arith.mulf %59, %6 : vector<8x1xf32>
    %66 = arith.addf %64, %65 : vector<8x1xf32>
    %c0_28 = arith.constant 0 : index
    %c0_29 = arith.constant 0 : index
    %67 = vector.load %arg11[%c0_28, %c0_29] : memref<8x1xf32, #tpu.memory_space<vmem>>, vector<8x1xf32>
    tpu.vector_store %arg11[%c0_28, %c0_29], %66 {strides = array<i32>} : memref<8x1xf32, #tpu.memory_space<vmem>>, vector<8x1xf32>,
    %c0_30 = arith.constant 0 : index
    %c0_31 = arith.constant 0 : index
    %68 = vector.load %arg12[%c0_30, %c0_31] : memref<8x1xf32, #tpu.memory_space<vmem>>, vector<8x1xf32>
    %69 = arith.mulf %59, %7 : vector<8x1xf32>
    %70 = arith.addf %68, %69 : vector<8x1xf32>
    %c0_32 = arith.constant 0 : index
    %c0_33 = arith.constant 0 : index
    %71 = vector.load %arg12[%c0_32, %c0_33] : memref<8x1xf32, #tpu.memory_space<vmem>>, vector<8x1xf32>
    tpu.vector_store %arg12[%c0_32, %c0_33], %70 {strides = array<i32>} : memref<8x1xf32, #tpu.memory_space<vmem>>, vector<8x1xf32>,
    %c0_i32_34 = arith.constant 0 : i32
    %72 = arith.cmpi eq, %arg0, %c0_i32_34 : i32
    %73 = arith.extui %72 : i1 to i32
    %c0_i32_35 = arith.constant 0 : i32
    %74 = arith.cmpi ne, %73, %c0_i32_35 : i32
    scf.if %74 {
      %c0_36 = arith.constant 0 : index
      %c0_37 = arith.constant 0 : index
      %75 = vector.load %arg10[%c0_36, %c0_37] : memref<8x1xf32, #tpu.memory_space<vmem>>, vector<8x1xf32>
      %76 = vector.shape_cast %75 : vector<8x1xf32> to vector<1x8x1xf32>
      %cst_38 = arith.constant dense<0.000000e+00> : vector<1xf32>
      %77 = vector.multi_reduction <add>, %76, %cst_38 [1, 2] : vector<1x8x1xf32> to vector<1xf32>
      %78 = vector.shape_cast %77 : vector<1xf32> to vector<1x1x1xf32>
      %79 = vector.extract %78[0, 0, 0] : f32 from vector<1x1x1xf32>
      %80 = vector.broadcast %79 : f32 to vector<1x1xf32>
      %c0_39 = arith.constant 0 : index
      %c0_40 = arith.constant 0 : index
      %81 = vector.load %arg7[%c0_39, %c0_40] : memref<1x1xf32, #tpu.memory_space<vmem>>, vector<1x1xf32>
      tpu.vector_store %arg7[%c0_39, %c0_40], %80 {strides = array<i32>} : memref<1x1xf32, #tpu.memory_space<vmem>>, vector<1x1xf32>,
      %c0_41 = arith.constant 0 : index
      %c0_42 = arith.constant 0 : index
      %82 = vector.load %arg11[%c0_41, %c0_42] : memref<8x1xf32, #tpu.memory_space<vmem>>, vector<8x1xf32>
      %83 = vector.shape_cast %82 : vector<8x1xf32> to vector<1x8x1xf32>
      %cst_43 = arith.constant dense<0.000000e+00> : vector<1xf32>
      %84 = vector.multi_reduction <add>, %83, %cst_43 [1, 2] : vector<1x8x1xf32> to vector<1xf32>
      %85 = vector.shape_cast %84 : vector<1xf32> to vector<1x1x1xf32>
      %86 = vector.extract %85[0, 0, 0] : f32 from vector<1x1x1xf32>
      %87 = vector.broadcast %86 : f32 to vector<1x1xf32>
      %c0_44 = arith.constant 0 : index
      %c0_45 = arith.constant 0 : index
      %88 = vector.load %arg8[%c0_44, %c0_45] : memref<1x1xf32, #tpu.memory_space<vmem>>, vector<1x1xf32>
      tpu.vector_store %arg8[%c0_44, %c0_45], %87 {strides = array<i32>} : memref<1x1xf32, #tpu.memory_space<vmem>>, vector<1x1xf32>,
      %c0_46 = arith.constant 0 : index
      %c0_47 = arith.constant 0 : index
      %89 = vector.load %arg12[%c0_46, %c0_47] : memref<8x1xf32, #tpu.memory_space<vmem>>, vector<8x1xf32>
      %90 = vector.shape_cast %89 : vector<8x1xf32> to vector<1x8x1xf32>
      %cst_48 = arith.constant dense<0.000000e+00> : vector<1xf32>
      %91 = vector.multi_reduction <add>, %90, %cst_48 [1, 2] : vector<1x8x1xf32> to vector<1xf32>
      %92 = vector.shape_cast %91 : vector<1xf32> to vector<1x1x1xf32>
      %93 = vector.extract %92[0, 0, 0] : f32 from vector<1x1x1xf32>
      %94 = vector.broadcast %93 : f32 to vector<1x1xf32>
      %c0_49 = arith.constant 0 : index
      %c0_50 = arith.constant 0 : index
      %95 = vector.load %arg9[%c0_49, %c0_50] : memref<1x1xf32, #tpu.memory_space<vmem>>, vector<1x1xf32>
      tpu.vector_store %arg9[%c0_49, %c0_50], %94 {strides = array<i32>} : memref<1x1xf32, #tpu.memory_space<vmem>>, vector<1x1xf32>,
    } else {
    }
    return
  }
  func.func @transform_0(%arg0: i32) -> (i32, i32) {
    %c0_i32 = arith.constant 0 : i32
    %c0_i32_0 = arith.constant 0 : i32
    return %arg0, %c0_i32 : i32, i32
  }
  func.func @transform_1(%arg0: i32) -> (i32, i32) {
    %c0_i32 = arith.constant 0 : i32
    %c0_i32_0 = arith.constant 0 : i32
    return %arg0, %c0_i32 : i32, i32
  }
  func.func @transform_2(%arg0: i32) -> (i32, i32) {
    %c0_i32 = arith.constant 0 : i32
    %c0_i32_0 = arith.constant 0 : i32
    return %arg0, %c0_i32 : i32, i32
  }
  func.func @transform_3(%arg0: i32) -> (i32, i32) {
    %c0_i32 = arith.constant 0 : i32
    %c0_i32_0 = arith.constant 0 : i32
    return %arg0, %c0_i32 : i32, i32
  }
  func.func @transform_4(%arg0: i32) -> (i32, i32) {
    %c0_i32 = arith.constant 0 : i32
    %c0_i32_0 = arith.constant 0 : i32
    return %arg0, %c0_i32 : i32, i32
  }
  func.func @transform_5(%arg0: i32) -> (i32, i32) {
    %c0_i32 = arith.constant 0 : i32
    %c0_i32_0 = arith.constant 0 : i32
    return %arg0, %c0_i32 : i32, i32
  }
  func.func @transform_6(%arg0: i32) -> (i32, i32) {
    %c0_i32 = arith.constant 0 : i32
    %c0_i32_0 = arith.constant 0 : i32
    %c0_i32_1 = arith.constant 0 : i32
    return %c0_i32, %c0_i32_0 : i32, i32
  }
  func.func @transform_7(%arg0: i32) -> (i32, i32) {
    %c0_i32 = arith.constant 0 : i32
    %c0_i32_0 = arith.constant 0 : i32
    %c0_i32_1 = arith.constant 0 : i32
    return %c0_i32, %c0_i32_0 : i32, i32
  }
  func.func @transform_8(%arg0: i32) -> (i32, i32) {
    %c0_i32 = arith.constant 0 : i32
    %c0_i32_0 = arith.constant 0 : i32
    %c0_i32_1 = arith.constant 0 : i32
    return %c0_i32, %c0_i32_0 : i32, i32
  }
}

</mosaic_0001>

<bundles_post_ra>
// kernel: eq.29
= control target key start
LH: loop header
LB: loop body
LE: loop exit
PB: predicated region body
PF: predicated region fallthrough
CT: control target
= control target key end

     0   :  { %vm8_vm0 = vcmask 23552   ;;  %vm14_vm1 = vcmask 48152   ;;  %s42_s0 = inlined_call_operand.vmem [shape: s32[2,3], index: 0, kind: input, shape index: {}]   ;;  %s43_s1 = inlined_call_operand.vmem [shape: s32[6], index: 1, kind: output, shape index: {}]  }
   0x1   :  { %v5_v0 = vld [vmem:[%s42_s0] sm:$0x3]  ;;  %s25_s0 = smov 3  }
   0x2   :  { %6 = vst [vmem:[#allocation1] sm:$0x3] %v5_v0 }
   0x9   :  { %v11_v1 = vld [vmem:[#allocation1 + $0x1] sm:$0x1]   ;;  %v7_v2 = vld [vmem:[#allocation1] sm:$0x1]  }
   0xa   :  { %12 = vrot.lane.b32.xlu0 %v11_v1, %s25_s0  ;;  %9 = vst.msk [vmem:[#allocation0] sm:$0x1] %vm8_vm0, %v7_v2  }
  0x7c   :  { %v13_v3 = vpop.permute.xlu0 %12  }
  0x7d   :  { %15 = vst.msk [vmem:[#allocation0] sm:$0x1] %vm14_vm1, %v13_v3  }
  0x84   :  { %v20_v4 = vld [vmem:[#allocation0] sm:$0x1] }
  0x85   :  { %23 = vst [vmem:[%s43_s1] sm:$0x1] %v20_v4 }

// kernel: _sskd_loss_core.5
= control target key start
LH: loop header
LB: loop body
LE: loop exit
PB: predicated region body
PF: predicated region fallthrough
CT: control target
= control target key end

     0   :  { %vm26_vm0 = vcmask 15360   ;;  %s170_s0 = inlined_call_operand.vmem [shape: f32[8,2], index: 0, kind: input, shape index: {}]   ;;  %s171_s1 = inlined_call_operand.vmem [shape: f32[8,2], index: 1, kind: input, shape index: {}]   ;;  %s172_s2 = inlined_call_operand.vmem [shape: f32[8,1], index: 2, kind: input, shape index: {}]   ;;  %s173_s3 = inlined_call_operand.hbm [shape: f32[1,1], index: 3, kind: output, shape index: {}]  }
   0x1   :  { %v21_v0 = vld [vmem:[%s170_s0] sm:$0xff] }
   0x2   :  { %v23_v1 = vld [vmem:[%s171_s1] sm:$0xff] }
   0x3   :  { %8 = vsyncpa [#allocation4], 0  ;;  %v22_v2 = vmul.f32 2.0, %v21_v0  ;;  %v24_v3 = vmul.f32 2.0, %v23_v1  ;;  %vm19_vm1 = vcmask 7168   ;;  %v131_v29 = vmov 0.0  }
   0x4   :  { %20 = vst.msk [vmem:[#allocation2] sm:$0xff] %vm19_vm1, %v131_v29  ;;  %v25_v30 = vld [vmem:[%s172_s2] sm:$0xff]  ;;  %s132_s16 = smov [#allocation3]   ;;  %vm79_vm2 = vcmask 0  }
   0x5   :  { %v27_v4 = vsel %vm26_vm0, %v22_v2, -inf  ;;  %v39_v5 = vsel %vm26_vm0, %v24_v3, -inf  ;;  %s87_s17 = sshll.u32 %s132_s16, 4  ;;  %s88_s17 = int_to_ptr.vmem [resolvable:$true] %s87_s17 }
   0x6   :  { %28 = vmax.xlane.f32.xlu0 %v27_v4  ;;  %s109_s18 = scalar_lea.vmem %s88_s17, 16  ;;  %s113_s19 = scalar_lea.vmem %s88_s17, 32 }
   0x7   :  { %p110_p0 = scmp.ne.s32.totalorder %s88_s17, %s109_s18  ;;  %p114_p1 = scmp.lt.s32.totalorder %s88_s17, %s88_s17 }
   0x8   :  { %p115_p2 = scmp.lt.s32.totalorder %s113_s19, %s109_s18 }
   0xa   :  { %40 = vmax.xlane.f32.xlu0 %v39_v5  ;;  %p116_p3 = por %p115_p2, %p114_p1 }
   0xb   :  { %v59_v32 = vld [vmem:[#allocation2] sm:$0xff] }
   0xc   :  { %p117_p4 = pnand %p116_p3, %p110_p0 }
  0x8f   :  { %v29_v6 = vpop.xlane.xlu0 %28 }
  0x90   :  { %v30_v7 = vsub.f32 %v22_v2, %v29_v6 }
  0x92   :  { %v31_v8 = vmul.f32 1.442695, %v30_v7 }
  0x93   :  { %v41_v9 = vpop.xlane.xlu0 %40 }
  0x94   :  { %99 = vpow2.f32 %v31_v8  ;;  %v42_v10 = vsub.f32 %v24_v3, %v41_v9 }
  0x96   :  { %v43_v11 = vmul.f32 1.442695, %v42_v10 }
  0x98   :  { %101 = vpow2.f32 %v43_v11 }
  0xa1   :  { %v100_v12 = vpop.eup %99 }
  0xa2   :  { %v33_v13 = vsel %vm26_vm0, %v100_v12, 0.0 }
  0xa3   :  { %34 = vadd.xlane.f32.xlu1 %v33_v13 }
  0xa5   :  { %v102_v14 = vpop.eup %101 }
  0xa6   :  { %v45_v15 = vsel %vm26_vm0, %v102_v14, 0.0 }
  0xa7   :  { %46 = vadd.xlane.f32.xlu1 %v45_v15 }
 0x12c   :  { %v35_v16 = vpop.xlane.xlu1 %34 }
 0x12d   :  { %103 = vlog2.f32 %v35_v16 }
 0x130   :  { %v47_v17 = vpop.xlane.xlu1 %46 }
 0x131   :  { %105 = vlog2.f32 %v47_v17 }
 0x132   :  { %107 = vrcp.f32 %v47_v17 }
 0x13a   :  { %v104_v18 = vpop.eup %103 }
 0x13b   :  { %v37_v19 = vmul.f32 0.6931472, %v104_v18 }
 0x13d   :  { %v38_v23 = vsub.f32 %v30_v7, %v37_v19 }
 0x13e   :  { %v106_v20 = vpop.eup %105 }
 0x13f   :  { %v49_v21 = vmul.f32 0.6931472, %v106_v20  ;;  %v108_v22 = vpop.eup %107 }
 0x140   :  { %v53_v25 = vmul.f32 %v108_v22, %v102_v14 }
 0x141   :  { %v50_v24 = vsub.f32 %v42_v10, %v49_v21 }
 0x143   :  { %v54_v26 = vsub.f32 %v50_v24, %v38_v23 }
 0x145   :  { %v55_v27 = vmul.f32 %v54_v26, %v53_v25 }
 0x147   :  { %v56_v28 = vsel %vm26_vm0, %v55_v27, 0.0 }
 0x148   :  { %57 = vadd.xlane.f32.xlu0 %v56_v28 }
 0x1d1   :  { %v58_v31 = vpop.xlane.xlu0 %57 }
 0x1d2   :  { %v60_v33 = vmul.f32 %v58_v31, %v25_v30 }
 0x1d4   :  { %v61_v34 = vadd.f32 %v60_v33, %v59_v32 }
 0x1d6   :  { %63 = vst.msk [vmem:[#allocation2] sm:$0xff] %vm19_vm1, %v61_v34 }
 0x1dd   :  { %v67_v35 = vld [vmem:[#allocation2] sm:$0xff] }
 0x1de   :  { %v68_v36 = vsel %vm19_vm1, %v67_v35, 0.0 }
 0x1df   :  { %69 = vadd.xlane.f32.xlu1 %v68_v36 }
 0x268   :  { %v70_v37 = vpop.xlane.xlu1 %69 }
 0x269   :  { %v71_v38 = vrot.slane %v70_v37, 4 }
 0x26b   :  { %v72_v39 = vadd.f32 %v71_v38, %v70_v37 }
 0x26d   :  { %v73_v40 = vrot.slane %v72_v39, 2 }
 0x26f   :  { %v74_v41 = vadd.f32 %v73_v40, %v72_v39 }
 0x271   :  { %v75_v42 = vrot.slane %v74_v41, 1 }
 0x273   :  { %v76_v43 = vadd.f32 %v75_v42, %v74_v41 }
 0x275   :  { %95 = vpush %v76_v43 }
 0x2a6   :  { %s96_s2 = spop %95 }
 0x2a7   :  { %v78_v44 = vstv %s96_s2 }
 0x2a8   :  { %80 = vst.msk [vmem:[#allocation3] sm:$0x1] %vm79_vm2, %v78_v44 }
 0x2a9   :  { %120 = shalt.err (!%p117_p4)
}
 0x2aa   :  { %90 = dma.vmem_to_hbm [thread:$0]  %s88_s17, 16, %s173_s3, [#allocation4]  }
 0x2ab   :  { %129 = dma.done.wait [#allocation4], 16  }
 0x2ac   :  { %130 = vsyncadd [#allocation4], 4294967280 }
 0x2ad   :  { %94 = vsyncpa [#allocation4], 1 }

// kernel: _sskd_loss_core.4
= control target key start
LH: loop header
LB: loop body
LE: loop exit
PB: predicated region body
PF: predicated region fallthrough
CT: control target
= control target key end

     0   :  { %vm27_vm0 = vcmask 261120   ;;  %v267_v0 = vmov 0.0   ;;  %vm268_vm1 = vmmov 0   ;;  %vm126_vm6 = vcmask 15360   ;;  %s339_s1 = inlined_call_operand.vmem [shape: f32[2,32], index: 1, kind: input, shape index: {}]   ;;  %s340_s4 = inlined_call_operand.vmem [shape: f32[2,32], index: 4, kind: input, shape index: {}]   ;;  %s341_s3 = inlined_call_operand.vmem [shape: f32[8,32], index: 3, kind: input, shape index: {}]   ;;  %s342_s0 = inlined_call_operand.vmem [shape: f32[8,32], index: 0, kind: input, shape index: {}]   ;;  %s343_s2 = inlined_call_operand.vmem [shape: f32[1,2], index: 2, kind: input, shape index: {}]   ;;  %s344_s5 = inlined_call_operand.vmem [shape: f32[1,2], index: 5, kind: input, shape index: {}]   ;;  %s345_s6 = inlined_call_operand.vmem [shape: f32[8,2], index: 6, kind: output, shape index: {0}]   ;;  %s346_s7 = inlined_call_operand.vmem [shape: f32[8,2], index: 7, kind: output, shape index: {1}]  }
   0x1   :  { %247 = vmatprep.subr.mxu0 %v267_v0  ;;  %252 = vmatprep.subr.mxu1 %v267_v0  ;;  %v26_v1 = vld [vmem:[%s339_s1] sm:$0x3] }
   0x2   :  { %v129_v2 = vld [vmem:[%s340_s4] sm:$0x3]  ;;  %248 = vmatpush3.xpose.msk.msra.mxu0 %vm27_vm0, %v26_v1  ;;  %249 = vmatprep.mubr.msk.f32.mxu0 %vm268_vm1, %v267_v0 }
   0x3   :  { %v128_v3 = vld [vmem:[%s341_s3] sm:$0xff]  ;;  %253 = vmatpush3.xpose.msk.msra.mxu1 %vm27_vm0, %v129_v2  ;;  %254 = vmatprep.mubr.msk.f32.mxu1 %vm268_vm1, %v267_v0 }
   0x4   :  { %v25_v4 = vld [vmem:[%s342_s0] sm:$0xff]  ;;  %v206_v6 = vmul.f32 %v128_v3, %v128_v3 }
   0x5   :  { %v104_v5 = vmul.f32 %v25_v4, %v25_v4  ;;  %250 = vmatmul.mubr.msk.f32.vlgmr.msra.gmra.mxu0 %vm27_vm0, %v25_v4  ;;  %v239_v10 = vld [vmem:[%s343_s2] ss:$0 sm:$0xff] }
   0x6   :  { %255 = vmatmul.mubr.msk.f32.vlgmr.msra.gmra.mxu1 %vm27_vm0, %v128_v3  ;;  %v207_v8 = vsel %vm27_vm0, %v206_v6, 0.0  ;;  %v242_v11 = vld [vmem:[%s344_s5] ss:$0 sm:$0xff] }
   0x7   :  { %v105_v7 = vsel %vm27_vm0, %v104_v5, 0.0 }
   0x8   :  { %106 = vadd.xlane.f32.xlu0 %v105_v7 }
   0xc   :  { %208 = vadd.xlane.f32.xlu0 %v207_v8 }
  0x91   :  { %v107_v9 = vpop.xlane.xlu0 %106 }
  0x92   :  { %v115_v13 = vmul.f32 %v239_v10, %v107_v9 }
  0x94   :  { %v116_v15 = vmax.f32 %v115_v13, 1e-16 }
  0x95   :  { %v209_v12 = vpop.xlane.xlu0 %208 }
  0x96   :  { %v217_v14 = vmul.f32 %v242_v11, %v209_v12  ;;  %259 = vrsqrt.f32 %v116_v15  ;;  %vm119_vm2 = vcmp.eq.f32.partialorder %v116_v15, inf  ;;  %v122_v21 = vand.u32 2147483648, %v116_v15 }
  0x97   :  { %vm121_vm4 = vcmp.eq.f32.partialorder %v116_v15, 0.0 }
  0x98   :  { %v218_v16 = vmax.f32 %v217_v14, 1e-16 }
  0x9a   :  { %261 = vrsqrt.f32 %v218_v16  ;;  %vm221_vm3 = vcmp.eq.f32.partialorder %v218_v16, inf  ;;  %v224_v22 = vand.u32 2147483648, %v218_v16  ;;  %vm223_vm5 = vcmp.eq.f32.partialorder %v218_v16, 0.0 }
  0xa3   :  { %v260_v17 = vpop.eup %259 }
  0xa4   :  { %v118_v19 = vmul.f32 %v260_v17, %v116_v15 }
  0xa6   :  { %v120_v23 = vsel %vm119_vm2, %v116_v15, %v118_v19 }
  0xa7   :  { %v262_v18 = vpop.eup %261  ;;  %v123_v25 = vsel %vm121_vm4, %v122_v21, %v120_v23 }
  0xa8   :  { %v220_v20 = vmul.f32 %v262_v18, %v218_v16  ;;  %263 = vrcp.f32 %v123_v25 }
  0xaa   :  { %v222_v24 = vsel %vm221_vm3, %v218_v16, %v220_v20 }
  0xab   :  { %v225_v26 = vsel %vm223_vm5, %v224_v22, %v222_v24 }
  0xac   :  { %265 = vrcp.f32 %v225_v26 }
  0xb5   :  { %v264_v27 = vpop.eup %263 }
  0xb9   :  { %v266_v28 = vpop.eup %265 }
  0xc5   :  { %v100_v29 = vpop.f32.mrf.mxu0 }
  0xc6   :  { %v202_v30 = vpop.f32.mrf.mxu1  ;;  %v125_v31 = vmul.f32 %v264_v27, %v100_v29 }
  0xc7   :  { %v227_v32 = vmul.f32 %v266_v28, %v202_v30  ;;  %v251_v33 = vpop.f32.mrf.mxu0 }
  0xc8   :  { %v256_v34 = vpop.f32.mrf.mxu1  ;;  %127 = vst.msk [vmem:[%s345_s6] sm:$0xff] %vm126_vm6, %v125_v31 }
  0xc9   :  { %228 = vst.msk [vmem:[%s346_s7] sm:$0xff] %vm126_vm6, %v227_v32 }

// kernel: _sskd_loss_core.3
= control target key start
LH: loop header
LB: loop body
LE: loop exit
PB: predicated region body
PF: predicated region fallthrough
CT: control target
= control target key end

     0   :  { %14 = vsyncpa [#allocation6], 0  ;;  %v293_v1 = vmov 0   ;;  %s390_s0 = inlined_call_operand.vmem [shape: f32[8,32], index: 0, kind: input, shape index: {}]   ;;  %s391_s1 = inlined_call_operand.vmem [shape: f32[8,32], index: 1, kind: input, shape index: {}]   ;;  %s392_s2 = inlined_call_operand.vmem [shape: s32[8,1], index: 2, kind: input, shape index: {}]   ;;  %s393_s3 = inlined_call_operand.vmem [shape: f32[8,1], index: 3, kind: input, shape index: {}]   ;;  %s394_s4 = inlined_call_operand.vmem [shape: f32[8,1], index: 4, kind: input, shape index: {}]   ;;  %s395_s5 = inlined_call_operand.vmem [shape: f32[8,1], index: 5, kind: input, shape index: {}]   ;;  %s396_s6 = inlined_call_operand.hbm [shape: f32[1,1], index: 6, kind: output, shape index: {0}]   ;;  %s397_s7 = inlined_call_operand.hbm [shape: f32[1,1], index: 7, kind: output, shape index: {1}]   ;;  %s398_s8 = inlined_call_operand.hbm [shape: f32[1,1], index: 8, kind: output, shape index: {2}]  }
   0x1   :  { %v38_v0 = vld [vmem:[%s393_s3] sm:$0xff]  ;;  %213 = vset.pattern.permute.xlu0 %v293_v1  ;;  %214 = vset.pattern.permute.xlu1 %v293_v1 }
   0x2   :  { %15 = vsyncpa [#allocation8], 0  ;;  %68 = vperm.xlu0 %213, %v38_v0   ;;  %v36_v2 = vld [vmem:[%s390_s0] sm:$0xff]  ;;  %vm42_vm0 = vcmask 261120   ;;  %v55_v29 = vlaneseq  ;;  %vm32_vm2 = vcmask 7168   ;;  %v294_v46 = vmov 0.0  }
   0x3   :  { %v37_v3 = vld [vmem:[%s391_s1] sm:$0xff]  ;;  %v43_v9 = vsel %vm42_vm0, %v36_v2, -inf  ;;  %33 = vst.msk [vmem:[#allocation2] sm:$0xff] %vm32_vm2, %v294_v46  ;;  %34 = vst.msk [vmem:[#allocation3] sm:$0xff] %vm32_vm2, %v294_v46  ;;  %vm133_vm3 = vcmask 0  }
   0x4   :  { %v41_v25 = vld [vmem:[%s392_s2] sm:$0xff]  ;;  %v56_v30 = vand.u32 127, %v55_v29  ;;  %35 = vst.msk [vmem:[#allocation4] sm:$0xff] %vm32_vm2, %v294_v46 }
   0x5   :  { %v39_v50 = vld [vmem:[%s394_s4] sm:$0xff]  ;;  %s295_s4 = smov [#allocation5]  }
   0x6   :  { %v40_v55 = vld [vmem:[%s395_s5] sm:$0xff]  ;;  %s167_s5 = sshll.u32 %s295_s4, 4  ;;  %s168_s5 = int_to_ptr.vmem [resolvable:$true] %s167_s5 }
   0x7   :  { %s229_s14 = scalar_lea.vmem %s168_s5, 16  ;;  %s233_s15 = scalar_lea.vmem %s168_s5, 32 }
   0x8   :  { %p230_p0 = scmp.ne.s32.totalorder %s168_s5, %s229_s14  ;;  %p234_p1 = scmp.lt.s32.totalorder %s168_s5, %s168_s5 }
   0x9   :  { %p235_p2 = scmp.lt.s32.totalorder %s233_s15, %s229_s14 }
   0xa   :  { %v105_v52 = vld [vmem:[#allocation2] sm:$0xff]  ;;  %v110_v57 = vld [vmem:[#allocation3] sm:$0xff] }
   0xb   :  { %v114_v58 = vld [vmem:[#allocation4] sm:$0xff]  ;;  %p236_p3 = por %p235_p2, %p234_p1 }
   0xd   :  { %p237_p4 = pnand %p236_p3, %p230_p0 }
  0x7d   :  { %v69_v4 = vpop.permute.xlu0 %68 }
  0x7e   :  { %v71_v5 = vmul.f32 %v69_v4, %v36_v2  ;;  %v84_v6 = vmul.f32 %v69_v4, %v37_v3 }
  0x80   :  { %v85_v7 = vsel %vm42_vm0, %v84_v6, -inf  ;;  %v72_v8 = vsel %vm42_vm0, %v71_v5, -inf }
  0x81   :  { %86 = vmax.xlane.f32.xlu1 %v85_v7  ;;  %73 = vmax.xlane.f32.xlu0 %v72_v8 }
  0x85   :  { %44 = vmax.xlane.f32.xlu1 %v43_v9 }
 0x10a   :  { %v87_v10 = vpop.xlane.xlu1 %86  ;;  %v74_v11 = vpop.xlane.xlu0 %73 }
 0x10b   :  { %v75_v12 = vsub.f32 %v71_v5, %v74_v11  ;;  %v88_v15 = vsub.f32 %v84_v6, %v87_v10 }
 0x10d   :  { %v76_v16 = vmul.f32 1.442695, %v75_v12  ;;  %v89_v18 = vmul.f32 1.442695, %v88_v15 }
 0x10e   :  { %v45_v13 = vpop.xlane.xlu1 %44 }
 0x10f   :  { %v46_v14 = vsub.f32 %v36_v2, %v45_v13 }
 0x111   :  { %v47_v17 = vmul.f32 1.442695, %v46_v14 }
 0x113   :  { %215 = vpow2.f32 %v47_v17 }
 0x114   :  { %217 = vpow2.f32 %v76_v16 }
 0x115   :  { %219 = vpow2.f32 %v89_v18 }
 0x120   :  { %v216_v19 = vpop.eup %215 }
 0x121   :  { %v49_v20 = vsel %vm42_vm0, %v216_v19, 0.0  ;;  %v218_v21 = vpop.eup %217 }
 0x122   :  { %50 = vadd.xlane.f32.xlu1 %v49_v20  ;;  %v78_v22 = vsel %vm42_vm0, %v218_v21, 0.0  ;;  %v220_v23 = vpop.eup %219 }
 0x123   :  { %v91_v24 = vsel %vm42_vm0, %v220_v23, 0.0 }
 0x126   :  { %79 = vadd.xlane.f32.xlu1 %v78_v22 }
 0x12a   :  { %92 = vadd.xlane.f32.xlu1 %v91_v24 }
 0x13b   :  { %58 = vperm.xlu1 %214, %v41_v25  }
 0x1ab   :  { %v51_v26 = vpop.xlane.xlu1 %50 }
 0x1ac   :  { %221 = vlog2.f32 %v51_v26 }
 0x1af   :  { %v80_v27 = vpop.xlane.xlu1 %79 }
 0x1b0   :  { %223 = vlog2.f32 %v80_v27 }
 0x1b3   :  { %v93_v28 = vpop.xlane.xlu1 %92 }
 0x1b4   :  { %225 = vlog2.f32 %v93_v28 }
 0x1b5   :  { %227 = vrcp.f32 %v93_v28 }
 0x1b7   :  { %v59_v31 = vpop.permute.xlu1 %58 }
 0x1b8   :  { %vm60_vm1 = vcmp.eq.s32.totalorder %v56_v30, %v59_v31 }
 0x1b9   :  { %v222_v32 = vpop.eup %221 }
 0x1ba   :  { %v53_v33 = vmul.f32 0.6931472, %v222_v32 }
 0x1bc   :  { %v54_v34 = vsub.f32 %v46_v14, %v53_v33 }
 0x1bd   :  { %v224_v35 = vpop.eup %223 }
 0x1be   :  { %v61_v36 = vsel %vm60_vm1, %v54_v34, 0.0  ;;  %v82_v38 = vmul.f32 0.6931472, %v224_v35 }
 0x1bf   :  { %v62_v37 = vsel %vm42_vm0, %v61_v36, 0.0 }
 0x1c0   :  { %63 = vadd.xlane.f32.xlu0 %v62_v37  ;;  %v83_v42 = vsub.f32 %v75_v12, %v82_v38 }
 0x1c1   :  { %v226_v39 = vpop.eup %225 }
 0x1c2   :  { %v95_v40 = vmul.f32 0.6931472, %v226_v39  ;;  %v228_v41 = vpop.eup %227 }
 0x1c3   :  { %v99_v44 = vmul.f32 %v228_v41, %v220_v23 }
 0x1c4   :  { %v96_v43 = vsub.f32 %v88_v15, %v95_v40 }
 0x1c6   :  { %v100_v45 = vsub.f32 %v96_v43, %v83_v42 }
 0x1c8   :  { %v101_v47 = vmul.f32 %v100_v45, %v99_v44 }
 0x1ca   :  { %v102_v48 = vsel %vm42_vm0, %v101_v47, 0.0 }
 0x1cb   :  { %103 = vadd.xlane.f32.xlu1 %v102_v48 }
 0x249   :  { %v64_v49 = vpop.xlane.xlu0 %63 }
 0x24a   :  { %v65_v51 = vsub.f32 0.0, %v64_v49 }
 0x24c   :  { %v106_v53 = vmul.f32 %v65_v51, %v39_v50 }
 0x24e   :  { %v107_v54 = vadd.f32 %v106_v53, %v105_v52 }
 0x250   :  { %109 = vst.msk [vmem:[#allocation2] sm:$0xff] %vm32_vm2, %v107_v54 }
 0x254   :  { %v104_v56 = vpop.xlane.xlu1 %103 }
 0x255   :  { %v111_v59 = vmul.f32 %v104_v56, %v39_v50  ;;  %v115_v60 = vmul.f32 %v104_v56, %v40_v55 }
 0x257   :  { %v112_v61 = vadd.f32 %v111_v59, %v110_v57  ;;  %v116_v62 = vadd.f32 %v115_v60, %v114_v58  ;;  %v121_v63 = vld [vmem:[#allocation2] sm:$0xff] }
 0x258   :  { %v122_v0 = vsel %vm32_vm2, %v121_v63, 0.0 }
 0x259   :  { %113 = vst.msk [vmem:[#allocation3] sm:$0xff] %vm32_vm2, %v112_v61  ;;  %117 = vst.msk [vmem:[#allocation4] sm:$0xff] %vm32_vm2, %v116_v62  ;;  %123 = vadd.xlane.f32.xlu0 %v122_v0 }
 0x260   :  { %v135_v1 = vld [vmem:[#allocation3] sm:$0xff]  ;;  %v148_v3 = vld [vmem:[#allocation4] sm:$0xff] }
 0x261   :  { %v136_v2 = vsel %vm32_vm2, %v135_v1, 0.0  ;;  %v149_v4 = vsel %vm32_vm2, %v148_v3, 0.0 }
 0x262   :  { %137 = vadd.xlane.f32.xlu0 %v136_v2 }
 0x266   :  { %150 = vadd.xlane.f32.xlu0 %v149_v4 }
 0x2e2   :  { %v124_v5 = vpop.xlane.xlu0 %123 }
 0x2e3   :  { %v125_v6 = vrot.slane %v124_v5, 4 }
 0x2e5   :  { %v126_v7 = vadd.f32 %v125_v6, %v124_v5 }
 0x2e7   :  { %v127_v8 = vrot.slane %v126_v7, 2 }
 0x2e9   :  { %v128_v9 = vadd.f32 %v127_v8, %v126_v7 }
 0x2eb   :  { %v138_v10 = vpop.xlane.xlu0 %137  ;;  %v129_v11 = vrot.slane %v128_v9, 1 }
 0x2ec   :  { %v139_v12 = vrot.slane %v138_v10, 4 }
 0x2ed   :  { %v130_v13 = vadd.f32 %v129_v11, %v128_v9 }
 0x2ee   :  { %v140_v14 = vadd.f32 %v139_v12, %v138_v10 }
 0x2ef   :  { %202 = vpush %v130_v13  ;;  %v151_v15 = vpop.xlane.xlu0 %150 }
 0x2f0   :  { %v141_v16 = vrot.slane %v140_v14, 2  ;;  %v152_v17 = vrot.slane %v151_v15, 4 }
 0x2f2   :  { %v153_v18 = vadd.f32 %v152_v17, %v151_v15  ;;  %v142_v19 = vadd.f32 %v141_v16, %v140_v14 }
 0x2f4   :  { %v154_v20 = vrot.slane %v153_v18, 2  ;;  %v143_v21 = vrot.slane %v142_v19, 1 }
 0x2f6   :  { %v155_v22 = vadd.f32 %v154_v20, %v153_v18  ;;  %v144_v23 = vadd.f32 %v143_v21, %v142_v19 }
 0x2f8   :  { %204 = vpush %v144_v23  ;;  %v156_v24 = vrot.slane %v155_v22, 1 }
 0x2fa   :  { %v157_v25 = vadd.f32 %v156_v24, %v155_v22 }
 0x2fc   :  { %206 = vpush %v157_v25 }
 0x320   :  { %s203_s13 = spop %202 }
 0x321   :  { %v132_v26 = vstv %s203_s13 }
 0x322   :  { %134 = vst.msk [vmem:[#allocation5] sm:$0x1] %vm133_vm3, %v132_v26 }
 0x323   :  { %240 = shalt.err (!%p237_p4)
}
 0x324   :  { %170 = dma.vmem_to_hbm [thread:$0]  %s168_s5, 16, %s396_s6, [#allocation6]  }
 0x325   :  { %s296_s18 = smov [#allocation7]   ;;  %s297_s21 = smov [#allocation9]  }
 0x326   :  { %s177_s19 = sshll.u32 %s296_s18, 4  ;;  %s187_s22 = sshll.u32 %s297_s21, 4  ;;  %s178_s19 = int_to_ptr.vmem [resolvable:$true] %s177_s19  ;;  %s188_s22 = int_to_ptr.vmem [resolvable:$true] %s187_s22 }
 0x327   :  { %s249_s23 = scalar_lea.vmem %s178_s19, 16  ;;  %s253_s24 = scalar_lea.vmem %s178_s19, 32 }
 0x328   :  { %p250_p5 = scmp.ne.s32.totalorder %s178_s19, %s249_s23  ;;  %p254_p6 = scmp.lt.s32.totalorder %s178_s19, %s178_s19 }
 0x329   :  { %s205_s20 = spop %204  ;;  %p255_p7 = scmp.lt.s32.totalorder %s253_s24, %s249_s23 }
 0x32a   :  { %v146_v27 = vstv %s205_s20 }
 0x32b   :  { %147 = vst.msk [vmem:[#allocation7] sm:$0x1] %vm133_vm3, %v146_v27  ;;  %p256_p8 = por %p255_p7, %p254_p6 }
 0x32d   :  { %p257_p9 = pnand %p256_p8, %p250_p5 }
 0x32f   :  { %260 = shalt.err (!%p257_p9)
}
 0x330   :  { %180 = dma.vmem_to_hbm [thread:$0]  %s178_s19, 16, %s397_s7, [#allocation8]  }
 0x331   :  { %s207_s6 = spop %206  ;;  %s269_s27 = scalar_lea.vmem %s188_s22, 16 }
 0x332   :  { %v159_v28 = vstv %s207_s6  ;;  %p270_p10 = scmp.ne.s32.totalorder %s188_s22, %s269_s27  ;;  %s273_s28 = scalar_lea.vmem %s188_s22, 32 }
 0x333   :  { %160 = vst.msk [vmem:[#allocation9] sm:$0x1] %vm133_vm3, %v159_v28  ;;  %p274_p11 = scmp.lt.s32.totalorder %s188_s22, %s188_s22  ;;  %p275_p12 = scmp.lt.s32.totalorder %s273_s28, %s269_s27 }
 0x335   :  { %p276_p13 = por %p275_p12, %p274_p11 }
 0x337   :  { %p277_p0 = pnand %p276_p13, %p270_p10 }
 0x339   :  { %280 = shalt.err (!%p277_p0)
}
 0x33a   :  { %190 = dma.vmem_to_hbm [thread:$0]  %s188_s22, 16, %s398_s8, [#allocation8]  }
 0x33b   :  { %289 = dma.done.wait [#allocation6], 16  }
 0x33c   :  { %290 = vsyncadd [#allocation6], 4294967280 }
 0x33d   :  { %291 = dma.done.wait [#allocation8], 32  }
 0x33e   :  { %292 = vsyncadd [#allocation8], 4294967264 }
 0x33f   :  { %200 = vsyncpa [#allocation6], 1 }
 0x340   :  { %201 = vsyncpa [#allocation8], 1 }

</bundles_post_ra>
